<compile_context>
chip_gen: v6e
topology: v6e:2x2x1
jax: 0.10.0
libtpu: 0.0.40
codegen_flags: <defaults>
</compile_context>

<pallas_src>
import functools

import numpy as np
import jax
import jax.numpy as jnp
from jax import lax
from jax.experimental import pallas as pl
from jax.experimental.pallas import tpu as pltpu

LANE = 128
VMEM_BUDGET = 24 * 1024 * 1024   # target working set (safe on v7x's 64 MiB VMEM)
VMEM_LIMIT = 32 * 1024 * 1024    # explicit scoped-VMEM limit handed to Mosaic
MAX_COL_TILE = 8192              # cap on fused lane-dense columns per grid step
TK_NOSPLIT = 1024                # contraction dims up to this run as one slab


def _conv_matmul_kernel(x_ref, w_ref, b_ref, o_ref, acc_ref):
    # x_ref  : (tk, TILE)        im2col row-slab x fused column tile
    # w_ref  : (C_out, tk)       scale-folded conv weight slab
    # b_ref  : (C_out, 1)        bias
    # o_ref  : (nb, C_out, tc)   output block: nb whole images x tc columns
    # acc_ref: (C_out, TILE)     f32 accumulator, TILE == nb * tc
    k = pl.program_id(2)

    @pl.when(k == 0)
    def _init():
        acc_ref[...] = jnp.zeros_like(acc_ref)

    acc_ref[...] += jnp.dot(w_ref[...], x_ref[...],
                            preferred_element_type=jnp.float32)

    @pl.when(k == pl.num_programs(2) - 1)
    def _finalize():
        nb, _, tc = o_ref.shape
        bias = b_ref[...]
        for b in range(nb):  # static unroll; slices lane-aligned when tc % 128 == 0
            o_ref[b] = (acc_ref[:, b * tc:(b + 1) * tc] + bias).astype(o_ref.dtype)


def _pick_k_tiling(ckk):
    """Return (tk, ckk_padded, kt): contraction tile, padded size, #k steps."""
    if ckk <= TK_NOSPLIT:
        return ckk, ckk, 1
    # prefer a multiple-of-128 divisor of CKK (no zero padding needed)
    for tk in range(TK_NOSPLIT, LANE - 1, -LANE):
        if ckk % tk == 0:
            return tk, ckk, ckk // tk
    tk = 512
    kt = -(-ckk // tk)
    return tk, tk * kt, kt


def _pick_col_tiling(n, cols_b, c_out, tk):
    """Return (nb, tc). A grid step covers nb whole images x tc columns each:
    either nb == 1 with tc | cols_b and tc % 128 == 0, or tc == cols_b with
    nb | N (block then spans the full fused column axis -> always legal)."""
    # per-step VMEM: x 2*tk*T*4 + out 2*C_out*T*4 + acc C_out*T*4 + w 2*C_out*tk*4
    fixed = 8 * c_out * (tk + 1)
    per_col = 4 * (2 * tk + 3 * c_out)
    max_cols = (VMEM_BUDGET - fixed) // per_col
    max_cols = max(LANE, min(MAX_COL_TILE, (max_cols // LANE) * LANE))

    if cols_b > max_cols and cols_b % LANE == 0:
        # split one image's columns into lane-aligned tiles that divide Ho*Wo
        d = cols_b // LANE
        for div in range(min(d, max_cols // LANE), 0, -1):
            if d % div == 0:
                return 1, div * LANE
        return 1, LANE
    # whole images per grid step: largest divisor of N fitting the budget
    nb = 1
    for cand in range(min(n, max(1, max_cols // cols_b)), 0, -1):
        if n % cand == 0:
            nb = cand
            break
    return nb, cols_b


def equalized_conv2d_forward(x_nchw, weight, bias, stride, pad, a=0.0):
    """x: (N, C_in, H, W); weight: Conv2d layout (C_out, C_in, K, K); bias: (C_out,)."""
    return _equalized_conv2d_jit(x_nchw, weight, bias, int(stride), int(pad), float(a))


@functools.partial(jax.jit, static_argnums=(3, 4, 5))
def _equalized_conv2d_jit(x_nchw, weight, bias, stride, pad, a):
    N, C_in, H, W = x_nchw.shape
    C_out, _, K, _ = weight.shape
    s, p = stride, pad

    # equalized learning-rate scale (fan_in of the (c_out,c_in,k,k) weight)
    fan_in = C_in * K * K
    gain = float(np.sqrt(2.0 / (1.0 + a * a)))
    scale = gain / float(np.sqrt(fan_in))

    H_out = (H + 2 * p - K) // s + 1
    W_out = (W + 2 * p - K) // s + 1
    cols_b = H_out * W_out               # output columns per image
    CKK = C_in * K * K

    tk, CKK_p, kt = _pick_k_tiling(CKK)
    nb, tc = _pick_col_tiling(N, cols_b, C_out, tk)
    TILE = nb * tc                       # fused columns per grid step
    SB = N // nb                         # super-batches
    tpsb = (nb * cols_b) // TILE         # column tiles per super-batch

    # ---- wrapper-side im2col in fused (super-batch, CKK, nb*Ho*Wo) layout ----
    x = x_nchw.astype(jnp.float32)
    xp = jnp.pad(x, ((0, 0), (0, 0), (p, p), (p, p)))
    Hp, Wp = H + 2 * p, W + 2 * p
    # cheap transpose of the (small, pre-im2col) input only; trivial when nb == 1
    xp = xp.reshape(SB, nb, C_in, Hp, Wp).transpose(0, 2, 1, 3, 4)
    taps = []
    for dy in range(K):
        for dx in range(K):
            taps.append(xp[:, :, :,
                           dy:dy + (H_out - 1) * s + 1:s,
                           dx:dx + (W_out - 1) * s + 1:s])   # (SB, C_in, nb, Ho, Wo)
    patches = jnp.stack(taps, axis=2)                        # (SB, C_in, K*K, nb, Ho, Wo)
    xcols = patches.reshape(SB, CKK, nb * cols_b)            # rows (ci,dy,dx); cols (b,oy,ox)

    # fold the equalized-lr scale into the weight at trace time
    w2d = (weight.reshape(C_out, CKK) * scale).astype(jnp.float32)
    if CKK_p != CKK:                      # zero-pad reduction axis only (rare)
        xcols = jnp.pad(xcols, ((0, 0), (0, CKK_p - CKK), (0, 0)))
        w2d = jnp.pad(w2d, ((0, 0), (0, CKK_p - CKK)))
    b2 = bias.reshape(C_out, 1).astype(jnp.float32)

    out = pl.pallas_call(
        _conv_matmul_kernel,
        out_shape=jax.ShapeDtypeStruct((N, C_out, cols_b), jnp.float32),
        grid=(SB, tpsb, kt),
        in_specs=[
            pl.BlockSpec((None, tk, TILE), lambda sb, t, k: (sb, k, t)),
            pl.BlockSpec((C_out, tk), lambda sb, t, k: (0, k)),
            pl.BlockSpec((C_out, 1), lambda sb, t, k: (0, 0)),
        ],
        out_specs=pl.BlockSpec((nb, C_out, tc), lambda sb, t, k: (sb, 0, t)),
        scratch_shapes=[pltpu.VMEM((C_out, TILE), jnp.float32)],
        compiler_params=pltpu.CompilerParams(
            dimension_semantics=("parallel", "parallel", "arbitrary"),
            vmem_limit_bytes=VMEM_LIMIT),
    )(xcols, w2d, b2)

    # contiguous view back to NCHW: no slice, no transpose, no extra pass
    return out.reshape(N, C_out, H_out, W_out)


def reference_forward(x_nchw, weight, bias, stride, pad, a=0.0):
    """Pure-JAX reference (lax conv) for verification."""
    C_out, C_in, K, _ = weight.shape
    fan_in = C_in * K * K
    gain = float(np.sqrt(2.0 / (1.0 + a * a)))
    scale = gain / float(np.sqrt(fan_in))
    y = lax.conv_general_dilated(
        x_nchw.astype(jnp.float32) * scale, weight.astype(jnp.float32),
        window_strides=(stride, stride),
        padding=[(pad, pad)] * 2,
        dimension_numbers=("NCHW", "OIHW", "NCHW"))
    return y + bias.reshape(1, -1, 1, 1)


if __name__ == "__main__":
    # module config: equalized_conv2d(c_in=4, c_out=8, k_size=3, stride=1, pad=1)
    c_in, c_out, k_size, stride, pad = 4, 8, 3, 1, 1
    N, H, W = 2, 16, 16

    key = jax.random.PRNGKey(0)
    kx, kw = jax.random.split(key)
    x = jax.random.normal(kx, (N, c_in, H, W), dtype=jnp.float32)
    # torch.nn.init.normal(weight) -> N(0, 1) on the (c_out, c_in, k, k) tensor
    weight = jax.random.normal(kw, (c_out, c_in, k_size, k_size), dtype=jnp.float32)
    # self.bias is initialized to zeros(c_out)
    bias = jnp.zeros((c_out,), dtype=jnp.float32)

    out = jax.block_until_ready(
        equalized_conv2d_forward(x, weight, bias, stride, pad))
    ref = jax.block_until_ready(
        reference_forward(x, weight, bias, stride, pad))
    np.testing.assert_allclose(np.asarray(out), np.asarray(ref), rtol=1e-4, atol=1e-4)

    print("KERNEL_OK")
</pallas_src>

<mosaic_0001>
module attributes {stable_mosaic.version = 11 : i64} {
  func.func @_conv_matmul_kernel(%arg0: i32, %arg1: i32, %arg2: i32, %arg3: memref<1x36x512xf32, #tpu.memory_space<vmem>>, %arg4: memref<8x36xf32, #tpu.memory_space<vmem>>, %arg5: memref<8x1xf32, #tpu.memory_space<vmem>>, %arg6: memref<2x8x256xf32, #tpu.memory_space<vmem>>, %arg7: memref<8x512xf32, #tpu.memory_space<vmem>>) attributes {dimension_semantics = [#tpu.dimension_semantics<parallel>, #tpu.dimension_semantics<parallel>, #tpu.dimension_semantics<arbitrary>], iteration_bounds = array<i64: 1, 1, 1>, scalar_prefetch = 0 : i64, scratch_operands = 1 : i64, tpu.core_type = #tpu.core_type<tc>, window_params = [{transform_indices = @transform_0, window_bounds = array<i64: 1, 36, 512>}, {transform_indices = @transform_1, window_bounds = array<i64: 8, 36>}, {pipeline_mode = #tpu.pipeline_mode<synchronous>, transform_indices = @transform_2, window_bounds = array<i64: 8, 1>}, {transform_indices = @transform_3, window_bounds = array<i64: 2, 8, 256>}]} {
    %c0_i32 = arith.constant 0 : i32
    %0 = arith.cmpi eq, %arg2, %c0_i32 : i32
    %1 = arith.extui %0 : i1 to i32
    %c0_i32_0 = arith.constant 0 : i32
    %2 = arith.cmpi ne, %1, %c0_i32_0 : i32
    scf.if %2 {
      %cst_11 = arith.constant 0.000000e+00 : f32
      %13 = vector.broadcast %cst_11 : f32 to vector<8x512xf32>
      %c0_12 = arith.constant 0 : index
      %c0_13 = arith.constant 0 : index
      %14 = vector.load %arg7[%c0_12, %c0_13] : memref<8x512xf32, #tpu.memory_space<vmem>>, vector<8x512xf32>
      tpu.vector_store %arg7[%c0_12, %c0_13], %13 {strides = array<i32>} : memref<8x512xf32, #tpu.memory_space<vmem>>, vector<8x512xf32>,
    } else {
    }
    %c0 = arith.constant 0 : index
    %c0_1 = arith.constant 0 : index
    %3 = vector.load %arg7[%c0, %c0_1] : memref<8x512xf32, #tpu.memory_space<vmem>>, vector<8x512xf32>
    %c0_2 = arith.constant 0 : index
    %c0_3 = arith.constant 0 : index
    %4 = vector.load %arg4[%c0_2, %c0_3] : memref<8x36xf32, #tpu.memory_space<vmem>>, vector<8x36xf32>
    %c0_4 = arith.constant 0 : index
    %c0_5 = arith.constant 0 : index
    %c0_6 = arith.constant 0 : index
    %5 = vector.load %arg3[%c0_4, %c0_5, %c0_6] : memref<1x36x512xf32, #tpu.memory_space<vmem>>, vector<1x36x512xf32>
    %6 = vector.shape_cast %5 : vector<1x36x512xf32> to vector<36x512xf32>
    %cst = arith.constant dense<0.000000e+00> : vector<8x512xf32>
    %7 = tpu.matmul %4, %6, %cst {dimension_numbers = #tpu.dot_dimension_numbers<[1], [0], [0], [1], [0, 0, 1, 1], [], []>} : vector<8x36xf32>, vector<36x512xf32>, vector<8x512xf32> -> vector<8x512xf32>
    %8 = arith.addf %3, %7 : vector<8x512xf32>
    %c0_7 = arith.constant 0 : index
    %c0_8 = arith.constant 0 : index
    %9 = vector.load %arg7[%c0_7, %c0_8] : memref<8x512xf32, #tpu.memory_space<vmem>>, vector<8x512xf32>
    tpu.vector_store %arg7[%c0_7, %c0_8], %8 {strides = array<i32>} : memref<8x512xf32, #tpu.memory_space<vmem>>, vector<8x512xf32>,
    %c0_i32_9 = arith.constant 0 : i32
    %10 = arith.cmpi eq, %arg2, %c0_i32_9 : i32
    %11 = arith.extui %10 : i1 to i32
    %c0_i32_10 = arith.constant 0 : i32
    %12 = arith.cmpi ne, %11, %c0_i32_10 : i32
    scf.if %12 {
      %c0_11 = arith.constant 0 : index
      %c0_12 = arith.constant 0 : index
      %13 = vector.load %arg5[%c0_11, %c0_12] : memref<8x1xf32, #tpu.memory_space<vmem>>, vector<8x1xf32>
      %c0_13 = arith.constant 0 : index
      %c0_14 = arith.constant 0 : index
      %14 = vector.load %arg7[%c0_13, %c0_14] : memref<8x512xf32, #tpu.memory_space<vmem>>, vector<8x256xf32>
      %15 = vector.broadcast %13 : vector<8x1xf32> to vector<8x256xf32>
      %16 = arith.addf %14, %15 : vector<8x256xf32>
      %c0_15 = arith.constant 0 : index
      %c0_16 = arith.constant 0 : index
      %c0_17 = arith.constant 0 : index
      %17 = vector.load %arg6[%c0_15, %c0_16, %c0_17] : memref<2x8x256xf32, #tpu.memory_space<vmem>>, vector<1x8x256xf32>
      %18 = vector.shape_cast %17 : vector<1x8x256xf32> to vector<8x256xf32>
      %19 = vector.shape_cast %16 : vector<8x256xf32> to vector<1x8x256xf32>
      tpu.vector_store %arg6[%c0_15, %c0_16, %c0_17], %19 {strides = array<i32>} : memref<2x8x256xf32, #tpu.memory_space<vmem>>, vector<1x8x256xf32>,
      %c0_18 = arith.constant 0 : index
      %c256 = arith.constant 256 : index
      %20 = vector.load %arg7[%c0_18, %c256] : memref<8x512xf32, #tpu.memory_space<vmem>>, vector<8x256xf32>
      %21 = vector.broadcast %13 : vector<8x1xf32> to vector<8x256xf32>
      %22 = arith.addf %20, %21 : vector<8x256xf32>
      %c1 = arith.constant 1 : index
      %c0_19 = arith.constant 0 : index
      %c0_20 = arith.constant 0 : index
      %23 = vector.load %arg6[%c1, %c0_19, %c0_20] : memref<2x8x256xf32, #tpu.memory_space<vmem>>, vector<1x8x256xf32>
      %24 = vector.shape_cast %23 : vector<1x8x256xf32> to vector<8x256xf32>
      %25 = vector.shape_cast %22 : vector<8x256xf32> to vector<1x8x256xf32>
      tpu.vector_store %arg6[%c1, %c0_19, %c0_20], %25 {strides = array<i32>} : memref<2x8x256xf32, #tpu.memory_space<vmem>>, vector<1x8x256xf32>,
    } else {
    }
    return
  }
  func.func @transform_0(%arg0: i32, %arg1: i32, %arg2: i32) -> (i32, i32, i32) {
    %c0_i32 = arith.constant 0 : i32
    return %arg0, %arg2, %arg1 : i32, i32, i32
  }
  func.func @transform_1(%arg0: i32, %arg1: i32, %arg2: i32) -> (i32, i32) {
    %c0_i32 = arith.constant 0 : i32
    %c0_i32_0 = arith.constant 0 : i32
    return %c0_i32, %arg2 : i32, i32
  }
  func.func @transform_2(%arg0: i32, %arg1: i32, %arg2: i32) -> (i32, i32) {
    %c0_i32 = arith.constant 0 : i32
    %c0_i32_0 = arith.constant 0 : i32
    %c0_i32_1 = arith.constant 0 : i32
    return %c0_i32, %c0_i32_0 : i32, i32
  }
  func.func @transform_3(%arg0: i32, %arg1: i32, %arg2: i32) -> (i32, i32, i32) {
    %c0_i32 = arith.constant 0 : i32
    %c0_i32_0 = arith.constant 0 : i32
    return %arg0, %c0_i32, %arg1 : i32, i32, i32
  }
}

</mosaic_0001>

<bundles_post_ra>
// kernel: _equalized_conv2d_jit.1
= control target key start
LH: loop header
LB: loop body
LE: loop exit
PB: predicated region body
PF: predicated region fallthrough
CT: control target
= control target key end

     0   :  { %vm51_vm0 = vcmask 1043456   ;;  %v251_v3 = vmov 0.0   ;;  %vm47_vm1 = vcmask 293888   ;;  %v252_v23 = vmov 0   ;;  %s351_s0 = inlined_call_operand.vmem [shape: f32[1,36,512], index: 0, kind: input, shape index: {}]   ;;  %s352_s1 = inlined_call_operand.vmem [shape: f32[8,36], index: 1, kind: input, shape index: {}]   ;;  %s353_s2 = inlined_call_operand.vmem [shape: f32[8,1], index: 2, kind: input, shape index: {}]   ;;  %s354_s3 = inlined_call_operand.vmem [shape: f32[2,8,256], index: 3, kind: output, shape index: {}]  }
   0x1   :  { %v44_v0 = vld [vmem:[%s351_s0 + $0x88] sm:$0xf]  ;;  %v46_v1 = vld [vmem:[%s351_s0 + $0x98] sm:$0xf]  ;;  %v43_v2 = vld [vmem:[%s351_s0 + $0x80] sm:$0xf]  ;;  %128 = vmatprep.mubr.f32.mxu0 %v251_v3  ;;  %199 = vmatprep.mubr.f32.mxu1 %v251_v3 }
   0x2   :  { %240 = vmatprep.subr.msk.mxu0 %vm51_vm0, %v44_v0  ;;  %243 = vmatprep.subr.msk.mxu1 %vm51_vm0, %v46_v1  ;;  %v45_v4 = vld [vmem:[%s351_s0 + $0x90] sm:$0xf]  ;;  %v40_v5 = vld [vmem:[%s351_s0 + $0x68] sm:$0xff]  ;;  %v42_v6 = vld [vmem:[%s351_s0 + $0x78] sm:$0xff] }
   0x3   :  { %241 = vmatpush1.msk.msra.mxu0 %vm51_vm0, %v43_v2  ;;  %244 = vmatpush1.msk.msra.mxu1 %vm51_vm0, %v45_v4  ;;  %v39_v7 = vld [vmem:[%s351_s0 + $0x60] sm:$0xff]  ;;  %v41_v8 = vld [vmem:[%s351_s0 + $0x70] sm:$0xff]  ;;  %v36_v9 = vld [vmem:[%s351_s0 + $0x48] sm:$0xff] }
   0x4   :  { %88 = vmatprep.subr.mxu0 %v40_v5  ;;  %159 = vmatprep.subr.mxu1 %v42_v6  ;;  %v38_v10 = vld [vmem:[%s351_s0 + $0x58] sm:$0xff]  ;;  %v35_v11 = vld [vmem:[%s351_s0 + $0x40] sm:$0xff]  ;;  %v37_v12 = vld [vmem:[%s351_s0 + $0x50] sm:$0xff] }
   0x5   :  { %89 = vmatpush1.msra.mxu0 %v39_v7  ;;  %160 = vmatpush1.msra.mxu1 %v41_v8  ;;  %v32_v13 = vld [vmem:[%s351_s0 + $0x28] sm:$0xff]  ;;  %v34_v14 = vld [vmem:[%s351_s0 + $0x38] sm:$0xff]  ;;  %v31_v15 = vld [vmem:[%s351_s0 + $0x20] sm:$0xff] }
   0x6   :  { %90 = vmatprep.subr.mxu0 %v36_v9  ;;  %161 = vmatprep.subr.mxu1 %v38_v10  ;;  %v33_v16 = vld [vmem:[%s351_s0 + $0x30] sm:$0xff]  ;;  %v28_v17 = vld [vmem:[%s351_s0 + $0x8] sm:$0xff]  ;;  %v30_v18 = vld [vmem:[%s351_s0 + $0x18] sm:$0xff] }
   0x7   :  { %91 = vmatpush1.msra.mxu0 %v35_v11  ;;  %162 = vmatpush1.msra.mxu1 %v37_v12  ;;  %v27_v19 = vld [vmem:[%s351_s0] sm:$0xff]  ;;  %v29_v20 = vld [vmem:[%s351_s0 + $0x10] sm:$0xff] }
   0x8   :  { %92 = vmatprep.subr.mxu0 %v32_v13  ;;  %163 = vmatprep.subr.mxu1 %v34_v14  ;;  %v26_v21 = vld [vmem:[%s352_s1] sm:$0xff] }
   0x9   :  { %93 = vmatpush1.msra.mxu0 %v31_v15  ;;  %164 = vmatpush1.msra.mxu1 %v33_v16  ;;  %v217_v22 = vld [vmem:[%s353_s2] sm:$0xff] }
   0xa   :  { %94 = vmatprep.subr.mxu0 %v28_v17  ;;  %165 = vmatprep.subr.mxu1 %v30_v18 }
   0xb   :  { %95 = vmatpush1.msra.mxu0 %v27_v19  ;;  %166 = vmatpush1.msra.mxu1 %v29_v20 }
   0xc   :  { %242 = vmatmul.mubr.msk.f32.vlgmr.msra.gmra.mxu0 %vm47_vm1, %v26_v21  ;;  %245 = vmatmul.mubr.msk.f32.vlgmr.msra.gmra.mxu1 %vm47_vm1, %v26_v21 }
   0xd   :  { %250 = vset.pattern.permute.xlu0 %v252_v23 }
   0xe   :  { %222 = vperm.xlu0 %250, %v217_v22  }
  0x89   :  { %v223_v24 = vpop.permute.xlu0 %222 }
  0xcc   :  { %v130_v25 = vpop.f32.mrf.mxu0  ;;  %v201_v26 = vpop.f32.mrf.mxu1 }
  0xcd   :  { %v225_v27 = vadd.f32 %v223_v24, %v130_v25  ;;  %v231_v28 = vadd.f32 %v223_v24, %v201_v26 }
  0xce   :  { %v132_v29 = vpop.f32.mrf.mxu0  ;;  %v203_v30 = vpop.f32.mrf.mxu1 }
  0xcf   :  { %227 = vst [vmem:[%s354_s3] sm:$0xff] %v225_v27  ;;  %246 = vst [vmem:[%s354_s3 + $0x10] sm:$0xff] %v231_v28  ;;  %v226_v31 = vadd.f32 %v223_v24, %v132_v29  ;;  %v232_v32 = vadd.f32 %v223_v24, %v203_v30 }
  0xd1   :  { %228 = vst [vmem:[%s354_s3 + $0x8] sm:$0xff] %v226_v31  ;;  %247 = vst [vmem:[%s354_s3 + $0x18] sm:$0xff] %v232_v32 }

</bundles_post_ra>
